<compile_context>
chip_gen: v5e
topology: v5e:2x2
jax: 0.10.0
libtpu: 0.0.40
codegen_flags: <defaults>
</compile_context>

<pallas_src>
import jax
import jax.numpy as jnp
from jax.experimental import pallas as pl
from jax.experimental.pallas import tpu as pltpu


# --------------------------------------------------------------------------- #
# Small helpers
# --------------------------------------------------------------------------- #
def _cdiv(a: int, b: int) -> int:
    return (a + b - 1) // b


def _round_up(a: int, b: int) -> int:
    return _cdiv(a, b) * b


def _sublane(itemsize: int) -> int:
    # dtype-aware sublane multiple: f32 -> 8, bf16/f16 -> 16, int8/fp8 -> 32
    return 8 if itemsize >= 4 else (16 if itemsize == 2 else 32)


def _vmem_budget_bytes() -> int:
    """Generation-aware VMEM limit (~96 MiB on v5e/v6e, ~48 MiB on v7x)."""
    try:
        cap = int(pltpu.get_tpu_info().vmem_capacity_bytes)
    except Exception:
        cap = 64 * 1024 * 1024  # conservative: v7x per-TC VMEM
    return min((cap * 3) // 4, 100 * 1024 * 1024)


def _pick_tiles_single_k(M, N, K, in_bytes, out_bytes, budget, sub):
    """Tile sizes for the skinny-K (single K block) regime."""
    tm = M if M <= 1024 else 512          # full M if small, else tall tiles
    tn = N if N <= 4096 else 4096         # whole output width when possible

    def footprint(tm_, tn_):
        # double-buffered x, P^T and output blocks
        return 2 * (tm_ * K * in_bytes + K * tn_ * in_bytes + tm_ * tn_ * out_bytes)

    # Shrink (tn first, then tm) until the pipelined footprint fits.
    while footprint(tm, tn) > budget and (tn > 128 or tm > sub):
        if tn >= tm and tn > 128:
            tn = max(128, ((tn // 2) // 128) * 128)
        elif tm > sub:
            tm = max(sub, ((tm // 2) // sub) * sub)
        else:
            break

    # v7x megacore: guarantee >= 2 blocks along at least one parallel axis
    # whenever the problem is large enough to split legally.
    if _cdiv(M, tm) == 1 and _cdiv(N, tn) == 1:
        if M >= 2 * sub:
            tm = _round_up(_cdiv(M, 2), sub)
        elif N >= 2 * 128:
            tn = _round_up(_cdiv(N, 2), 128)
    return tm, tn


# --------------------------------------------------------------------------- #
# Kernels
# --------------------------------------------------------------------------- #
def _pe_single_k_kernel(x_ref, pt_ref, o_ref):
    """Skinny-K path: one (tm, tn) output tile, K handled in a single block.

    x_ref : (tm, K)   activation tile
    pt_ref: (K, tn)   pre-transposed weight tile (MXU-native layout)
    o_ref : (tm, tn)  output tile
    """
    acc = jnp.dot(x_ref[...], pt_ref[...], preferred_element_type=jnp.float32)
    o_ref[...] = jnp.sin(acc).astype(o_ref.dtype)


def _pe_multi_k_inplace_kernel(x_ref, pt_ref, o_ref):
    """Large-K path, f32 output: accumulate directly into the revisited
    (VMEM-resident) output block; sin applied in place at the last K step."""
    k = pl.program_id(2)

    @pl.when(k == 0)
    def _init():
        o_ref[...] = jnp.zeros_like(o_ref)

    o_ref[...] += jnp.dot(x_ref[...], pt_ref[...],
                          preferred_element_type=jnp.float32)

    @pl.when(k == pl.num_programs(2) - 1)
    def _finalize():
        o_ref[...] = jnp.sin(o_ref[...])


def _pe_multi_k_scratch_kernel(x_ref, pt_ref, o_ref, acc_ref):
    """Large-K path, non-f32 output: f32 scratch accumulator."""
    k = pl.program_id(2)

    @pl.when(k == 0)
    def _init():
        acc_ref[...] = jnp.zeros_like(acc_ref)

    acc_ref[...] += jnp.dot(x_ref[...], pt_ref[...],
                            preferred_element_type=jnp.float32)

    @pl.when(k == pl.num_programs(2) - 1)
    def _finalize():
        o_ref[...] = jnp.sin(acc_ref[...]).astype(o_ref.dtype)


# --------------------------------------------------------------------------- #
# Wrapper
# --------------------------------------------------------------------------- #
@jax.jit
def _pos_enc_2d(x, P):
    """x: (M, K), P: (N, K)  ->  sin(x @ P.T) : (M, N) in x.dtype."""
    M, K = x.shape
    N, K2 = P.shape
    assert K == K2, "feature dims must match"

    out_dtype = x.dtype
    in_bytes = jnp.dtype(x.dtype).itemsize
    out_bytes = jnp.dtype(out_dtype).itemsize
    sub = _sublane(in_bytes)

    vmem_limit = _vmem_budget_bytes()
    tile_budget = vmem_limit // 2          # headroom for Mosaic-internal scratch

    # One-time weight transpose in the wrapper (weight is tiny vs. M*N output);
    # kernel then runs a transpose-free (tm,tk)x(tk,tn) MXU matmul.
    Pt = P.T                               # (K, N)

    cost = pl.CostEstimate(
        flops=2 * M * N * K,
        transcendentals=M * N,
        bytes_accessed=in_bytes * (M * K + N * K) + out_bytes * M * N,
    )

    single_k = K <= 2048                   # skinny-K PositionalEncoding regime

    if single_k:
        tm, tn = _pick_tiles_single_k(M, N, K, in_bytes, out_bytes,
                                      tile_budget, sub)
        grid = (_cdiv(M, tm), _cdiv(N, tn))
        return pl.pallas_call(
            _pe_single_k_kernel,
            out_shape=jax.ShapeDtypeStruct((M, N), out_dtype),
            grid_spec=pltpu.PrefetchScalarGridSpec(
                num_scalar_prefetch=0,
                grid=grid,
                in_specs=[
                    # x tile: (tm, K) -- K is a full-extent block dim (no pad)
                    pl.BlockSpec((tm, K), lambda i, j: (i, 0)),
                    # P^T tile: (K, tn)
                    pl.BlockSpec((K, tn), lambda i, j: (0, j)),
                ],
                out_specs=pl.BlockSpec((tm, tn), lambda i, j: (i, j)),
            ),
            compiler_params=pltpu.CompilerParams(
                dimension_semantics=("parallel", "parallel"),
                vmem_limit_bytes=vmem_limit,
            ),
            cost_estimate=cost,
        )(x, Pt)

    # ----- Large-K fallback: 3-D grid with K (reduction) last -------------- #
    tm = M if M <= 256 else 256
    tn = N if N <= 512 else 512
    tk = next((c for c in (512, 256, 128) if K % c == 0), None)
    if tk is None:
        # Rare path: pad K up to a 128-multiple block only when unavoidable.
        tk = 512
        Kp = _round_up(K, tk)
        x = jnp.pad(x, ((0, 0), (0, Kp - K)))
        Pt = jnp.pad(Pt, ((0, Kp - K), (0, 0)))
        K = Kp
    grid = (_cdiv(M, tm), _cdiv(N, tn), K // tk)

    if out_dtype == jnp.float32:
        kernel = _pe_multi_k_inplace_kernel
        scratch = []
    else:
        kernel = _pe_multi_k_scratch_kernel
        scratch = [pltpu.VMEM((tm, tn), jnp.float32)]

    return pl.pallas_call(
        kernel,
        out_shape=jax.ShapeDtypeStruct((M, N), out_dtype),
        grid_spec=pltpu.PrefetchScalarGridSpec(
            num_scalar_prefetch=0,
            grid=grid,
            in_specs=[
                pl.BlockSpec((tm, tk), lambda i, j, k: (i, k)),
                pl.BlockSpec((tk, tn), lambda i, j, k: (k, j)),
            ],
            out_specs=pl.BlockSpec((tm, tn), lambda i, j, k: (i, j)),
            scratch_shapes=scratch,
        ),
        compiler_params=pltpu.CompilerParams(
            dimension_semantics=("parallel", "parallel", "arbitrary"),
            vmem_limit_bytes=vmem_limit,
        ),
        cost_estimate=cost,
    )(x, Pt)


def positional_encoding(x, P):
    """Forward of PositionalEncoding: torch.cat([sin(x @ P.T)]) == sin(x @ P.T).

    x: (..., in_features), P: (out_features, in_features)
    returns (..., out_features) in x.dtype.
    """
    K = x.shape[-1]
    N = P.shape[0]
    x2 = x.reshape(-1, K)
    out = _pos_enc_2d(x2, P)
    return out.reshape(*x.shape[:-1], N)


# --------------------------------------------------------------------------- #
if __name__ == "__main__":
    key = jax.random.PRNGKey(0)
    kx, kp = jax.random.split(key)

    batch, in_dim, out_dim = 8, 32, 64
    x = jax.random.normal(kx, (batch, in_dim), dtype=jnp.float32)
    # Deterministic synthetic parameter P of shape (out_features, in_features),
    # matching the nn.Module's self.P used as x @ P.T.
    P = jax.random.normal(kp, (out_dim, in_dim), dtype=jnp.float32) * 0.1

    out = positional_encoding(x, P)
    out = jax.block_until_ready(out)

    # Reference check (plain JAX) to validate semantics.
    ref = jnp.sin(x @ P.T)
    assert out.shape == (batch, out_dim)
    assert jnp.allclose(out, ref, atol=1e-5, rtol=1e-5)

    print("KERNEL_OK")
</pallas_src>

<mosaic_0001>
module attributes {stable_mosaic.version = 11 : i64} {
  func.func @_pe_single_k_kernel(%arg0: i32, %arg1: i32, %arg2: memref<8x32xf32, #tpu.memory_space<vmem>>, %arg3: memref<32x64xf32, #tpu.memory_space<vmem>>, %arg4: memref<8x64xf32, #tpu.memory_space<vmem>>) attributes {dimension_semantics = [#tpu.dimension_semantics<parallel>, #tpu.dimension_semantics<parallel>], iteration_bounds = array<i64: 1, 1>, scalar_prefetch = 0 : i64, scratch_operands = 0 : i64, tpu.core_type = #tpu.core_type<tc>, window_params = [{transform_indices = @transform_0, window_bounds = array<i64: 8, 32>}, {transform_indices = @transform_1, window_bounds = array<i64: 32, 64>}, {transform_indices = @transform_2, window_bounds = array<i64: 8, 64>}]} {
    %c0 = arith.constant 0 : index
    %c0_0 = arith.constant 0 : index
    %0 = vector.load %arg2[%c0, %c0_0] : memref<8x32xf32, #tpu.memory_space<vmem>>, vector<8x32xf32>
    %c0_1 = arith.constant 0 : index
    %c0_2 = arith.constant 0 : index
    %1 = vector.load %arg3[%c0_1, %c0_2] : memref<32x64xf32, #tpu.memory_space<vmem>>, vector<32x64xf32>
    %cst = arith.constant dense<0.000000e+00> : vector<8x64xf32>
    %2 = tpu.matmul %0, %1, %cst {dimension_numbers = #tpu.dot_dimension_numbers<[1], [0], [0], [1], [0, 0, 1, 1], [], []>} : vector<8x32xf32>, vector<32x64xf32>, vector<8x64xf32> -> vector<8x64xf32>
    %3 = math.sin %2 : vector<8x64xf32>
    %c0_3 = arith.constant 0 : index
    %c0_4 = arith.constant 0 : index
    %4 = vector.load %arg4[%c0_3, %c0_4] : memref<8x64xf32, #tpu.memory_space<vmem>>, vector<8x64xf32>
    tpu.vector_store %arg4[%c0_3, %c0_4], %3 {strides = array<i32>} : memref<8x64xf32, #tpu.memory_space<vmem>>, vector<8x64xf32>,
    return
  }
  func.func @transform_0(%arg0: i32, %arg1: i32) -> (i32, i32) {
    %c0_i32 = arith.constant 0 : i32
    %c0_i32_0 = arith.constant 0 : i32
    return %arg0, %c0_i32 : i32, i32
  }
  func.func @transform_1(%arg0: i32, %arg1: i32) -> (i32, i32) {
    %c0_i32 = arith.constant 0 : i32
    %c0_i32_0 = arith.constant 0 : i32
    return %c0_i32, %arg1 : i32, i32
  }
  func.func @transform_2(%arg0: i32, %arg1: i32) -> (i32, i32) {
    %c0_i32 = arith.constant 0 : i32
    return %arg0, %arg1 : i32, i32
  }
}

</mosaic_0001>

<bundles_post_ra>
// kernel: _pos_enc_2d.1
= control target key start
LH: loop header
LB: loop body
LE: loop exit
PB: predicated region body
PF: predicated region fallthrough
CT: control target
= control target key end

     0   :  { %7 = vsyncpa [#allocation3], 0  ;;  %s432_s0 = inlined_call_operand.hbm [shape: f32[8,32], index: 0, kind: input, shape index: {}]   ;;  %s433_s1 = inlined_call_operand.hbm [shape: f32[32,64], index: 1, kind: input, shape index: {}]   ;;  %s434_s2 = inlined_call_operand.hbm [shape: f32[8,64], index: 2, kind: output, shape index: {}]  }
   0x1   :  { %8 = vsyncpa [#allocation6], 0 }
   0x2   :  { %9 = vsyncpa [#allocation4], 0  ;;  %s15_s11 = sshll.u32 %s432_s0, 4  ;;  %s340_s12 = smov [#allocation2]   ;;  %s16_s11 = int_to_ptr.hbm [resolvable:$true] %s15_s11 }
   0x3   :  { %s17_s13 = sshll.u32 %s340_s12, 4  ;;  %s25_s16 = sshll.u32 %s433_s1, 4  ;;  %s18_s13 = int_to_ptr.vmem [resolvable:$true] %s17_s13  ;;  %s26_s16 = int_to_ptr.hbm [resolvable:$true] %s25_s16 }
   0x4   :  { %20 = dma.hbm_to_vmem [thread:$0]  %s16_s11, 128, %s18_s13, [#allocation3]  }
   0x5   :  { %s341_s17 = smov [#allocation5]   ;;  %s342_s19 = smov 128  }
   0x6   :  { %s27_s18 = sshll.u32 %s341_s17, 4  ;;  %s343_s20 = smov 8   ;;  %s28_s18 = int_to_ptr.vmem [resolvable:$true] %s27_s18 }
   0x7   :  { %33 = dma.hbm_to_vmem [thread:$0]  %s26_s16, 512, %s28_s18, [#allocation6], %s342_s19, %s342_s19, %s343_s20  }
   0x8   :  { %334 = dma.done.wait [#allocation3], 128  }
   0x9   :  { %335 = vsyncadd [#allocation3], 4294967168 }
   0xa   :  { %336 = dma.done.wait [#allocation6], 512  }
   0xb   :  { %337 = vsyncadd [#allocation6], 4294966784  ;;  %v46_v0 = vld [vmem:[#allocation5 + $0x18] sm:$0xff]  ;;  %v45_v1 = vld [vmem:[#allocation5 + $0x10] sm:$0xff]  ;;  %vm47_vm0 = vcmask 261120   ;;  %s351_s0 = smov [#allocation7]  }
   0xc   :  { %63 = vmatpush.msra.mxu0 %v46_v0  ;;  %v44_v2 = vld [vmem:[#allocation5 + $0x8] sm:$0xff]  ;;  %v43_v3 = vld [vmem:[#allocation5] sm:$0xff]  ;;  %v42_v4 = vld [vmem:[#allocation2] sm:$0xff]  ;;  %v344_v17 = vmov 683565275   ;;  %s233_s1 = sshll.u32 %s351_s0, 4  ;;  %s234_s1 = int_to_ptr.vmem [resolvable:$true] %s233_s1 }
   0xd   :  { %v345_v19 = vmov 2475754826   ;;  %v346_v22 = vmov 2131351028   ;;  %v347_v25 = vmov 2102212464  }
   0xe   :  { %64 = vmatpush.msra.mxu0 %v45_v1  ;;  %v348_v28 = vmov 920167782   ;;  %v349_v31 = vmov 1326507024   ;;  %v350_v1 = vmov 0   ;;  %s235_s23 = sshll.u32 %s434_s2, 4  ;;  %s236_s23 = int_to_ptr.hbm [resolvable:$true] %s235_s23 }
  0x10   :  { %65 = vmatpush.msra.mxu0 %v44_v2 }
  0x12   :  { %66 = vmatpush.msra.mxu0 %v43_v3 }
  0x13   :  { %246 = vmatmul.msk.f32.vlgmr.msra.gmra.mxu0 %vm47_vm0, %v42_v4 }
  0x90   :  { %v373_v5 = vpop.f32.mrf.mxu0 }
  0x91   :  { %v74_v6 = vand.u32 2139095040, %v373_v5  ;;  %v71_v9 = vand.u32 2147483647, %v373_v5  ;;  %vm73_vm13 = vcmp.lt.s32.totalorder %v373_v5, 0 }
  0x93   :  { %v75_v7 = vshrl.u32 %v74_v6, 23  ;;  %v78_v11 = vand.u32 8388607, %v71_v9  ;;  %vm72_vm14 = vcmp.le.f32.partialorder %v71_v9, 0.7853982 }
  0x95   :  { %v247_v8 = vadd.s32 4294967169, %v75_v7  ;;  %v79_v15 = vor.u32 8388608, %v78_v11 }
  0x97   :  { %v81_v10 = vadd.s32 1, %v247_v8  ;;  %v390_v38 = vshll.u32 %v79_v15, 8 }
  0x99   :  { %vm82_vm1 = vcmp.gt.s32.totalorder %v81_v10, 0  ;;  %v120_v47 = vand.u32 65535, %v390_v38  ;;  %v121_v48 = vshrl.u32 %v390_v38, 16 }
  0x9a   :  { %v83_v12 = vsel %vm82_vm1, %v81_v10, 0 }
  0x9b   :  { %v85_v13 = vand.u32 31, %v83_v12  ;;  %v381_v16 = vshrl.u32 %v83_v12, 5 }
  0x9d   :  { %v379_v14 = vsub.s32 32, %v85_v13  ;;  %v88_v18 = vshll.u32 %v344_v17, %v85_v13  ;;  %v91_v20 = vshll.u32 %v345_v19, %v85_v13  ;;  %v94_v24 = vshll.u32 %v346_v22, %v85_v13 }
  0x9e   :  { %v97_v27 = vshll.u32 %v347_v25, %v85_v13  ;;  %v100_v30 = vshll.u32 %v348_v28, %v85_v13  ;;  %vm103_vm2 = vcmp.lt.s32.totalorder %v381_v16, 1  ;;  %vm106_vm3 = vcmp.lt.s32.totalorder %v381_v16, 4 }
  0x9f   :  { %v89_v21 = vshrl.u32 %v345_v19, %v379_v14  ;;  %v92_v23 = vshrl.u32 %v346_v22, %v379_v14  ;;  %v95_v26 = vshrl.u32 %v347_v25, %v379_v14  ;;  %v98_v29 = vshrl.u32 %v348_v28, %v379_v14 }
  0xa0   :  { %v101_v32 = vshrl.u32 %v349_v31, %v379_v14  ;;  %vm105_vm4 = vcmp.lt.s32.totalorder %v381_v16, 3  ;;  %vm104_vm5 = vcmp.lt.s32.totalorder %v381_v16, 2  ;;  %v87_v12 = vshrl.u32 %v344_v17, %v379_v14 }
  0xa1   :  { %v90_v33 = vor.u32 %v89_v21, %v88_v18  ;;  %v93_v34 = vor.u32 %v92_v23, %v91_v20  ;;  %v96_v35 = vor.u32 %v95_v26, %v94_v24  ;;  %v99_v36 = vor.u32 %v98_v29, %v97_v27 }
  0xa2   :  { %v102_v37 = vor.u32 %v101_v32, %v100_v30 }
  0xa3   :  { %v111_v39 = vsel %vm103_vm2, %v90_v33, %v93_v34  ;;  %v115_v40 = vsel %vm103_vm2, %v93_v34, %v96_v35  ;;  %v112_v41 = vsel %vm106_vm3, %v99_v36, 920167782  ;;  %v108_v8 = vsel %vm106_vm3, %v96_v35, 2102212464 }
  0xa4   :  { %v116_v42 = vsel %vm106_vm3, %v102_v37, 1326507024  ;;  %v113_v43 = vsel %vm105_vm4, %v96_v35, %v112_v41  ;;  %v107_v21 = vsel %vm103_vm2, %v87_v12, %v90_v33  ;;  %v109_v22 = vsel %vm105_vm4, %v93_v34, %v108_v8 }
  0xa5   :  { %v117_v44 = vsel %vm105_vm4, %v99_v36, %v116_v42  ;;  %v114_v45 = vsel %vm104_vm5, %v111_v39, %v113_v43  ;;  %v110_v14 = vsel %vm104_vm5, %v107_v21, %v109_v22  ;;  %vm226_vm2 = vcmask 523264  }
  0xa6   :  { %v118_v46 = vsel %vm104_vm5, %v115_v40, %v117_v44  ;;  %v144_v51 = vand.u32 65535, %v114_v45  ;;  %v145_v52 = vshrl.u32 %v114_v45, 16  ;;  %v164_v30 = vmul.u32 %v390_v38, %v110_v14 }
  0xa7   :  { %v122_v49 = vand.u32 65535, %v118_v46  ;;  %v123_v50 = vshrl.u32 %v118_v46, 16  ;;  %vm214_vm3 = vweird.f32 %v373_v5 }
  0xa8   :  { %v147_v55 = vmul.u32 %v145_v52, %v120_v47  ;;  %v148_v56 = vmul.u32 %v144_v51, %v121_v48  ;;  %v146_v60 = vmul.u32 %v144_v51, %v120_v47  ;;  %v149_v0 = vmul.u32 %v145_v52, %v121_v48 }
  0xa9   :  { %v125_v53 = vmul.u32 %v123_v50, %v120_v47  ;;  %v126_v54 = vmul.u32 %v122_v49, %v121_v48  ;;  %v124_v57 = vmul.u32 %v122_v49, %v120_v47  ;;  %v127_v59 = vmul.u32 %v123_v50, %v121_v48 }
  0xaa   :  { %v150_v61 = vshll.u32 %v147_v55, 16  ;;  %v152_v3 = vshll.u32 %v148_v56, 16  ;;  %v151_v19 = vshrl.u32 %v147_v55, 16  ;;  %v153_v25 = vshrl.u32 %v148_v56, 16 }
  0xab   :  { %v128_v58 = vshll.u32 %v125_v53, 16  ;;  %v130_v62 = vshll.u32 %v126_v54, 16  ;;  %v129_v13 = vshrl.u32 %v125_v53, 16  ;;  %v131_v23 = vshrl.u32 %v126_v54, 16 }
  0xac   :  { %vm154_vm7 = vc.u32 %v146_v60, %v150_v61  ;;  %v156_v4 = vadd.s32 %v150_v61, %v146_v60 }
  0xad   :  { %vm132_vm6 = vc.u32 %v124_v57, %v128_v58  ;;  %v134_v63 = vadd.s32 %v128_v58, %v124_v57  ;;  %v155_v7 = vsel %vm154_vm7, 1, %v350_v1 }
  0xae   :  { %v133_v2 = vsel %vm132_vm6, 1, %v350_v1  ;;  %v157_v11 = vadd.s32 %v155_v7, %v149_v0  ;;  %vm158_vm9 = vc.u32 %v156_v4, %v152_v3  ;;  %v160_v28 = vadd.s32 %v156_v4, %v152_v3 }
  0xaf   :  { %v135_v6 = vadd.s32 %v133_v2, %v127_v59  ;;  %vm136_vm8 = vc.u32 %v134_v63, %v130_v62  ;;  %v159_v18 = vsel %vm158_vm9, 1, %v350_v1 }
  0xb0   :  { %v137_v10 = vsel %vm136_vm8, 1, %v350_v1  ;;  %v161_v20 = vadd.s32 %v159_v18, %v157_v11 }
  0xb1   :  { %v139_v15 = vadd.s32 %v137_v10, %v135_v6 }
  0xb2   :  { %v162_v26 = vadd.s32 %v161_v20, %v151_v19 }
  0xb3   :  { %v140_v24 = vadd.s32 %v139_v15, %v129_v13 }
  0xb4   :  { %v163_v17 = vadd.s32 %v162_v26, %v153_v25 }
  0xb5   :  { %v141_v27 = vadd.s32 %v140_v24, %v131_v23 }
  0xb6   :  { %v167_v29 = vadd.s32 1, %v163_v17 }
  0xb7   :  { %vm166_vm10 = vc.u32 %v141_v27, %v160_v28  ;;  %v165_v16 = vadd.s32 %v160_v28, %v141_v27 }
  0xb8   :  { %v168_v31 = vsel %vm166_vm10, %v167_v29, %v163_v17 }
  0xb9   :  { %v169_v32 = vadd.s32 %v168_v31, %v164_v30 }
  0xbb   :  { %v170_v33 = vadd.s32 536870912, %v169_v32 }
  0xbd   :  { %v171_v35 = vshrl.u32 %v170_v33, 30 }
  0xbf   :  { %v172_v36 = vshll.u32 %v171_v35, 30  ;;  %v195_v55 = vsub.s32 4, %v171_v35 }
  0xc1   :  { %v173_v34 = vsub.s32 %v169_v32, %v172_v36  ;;  %v196_v60 = vsel %vm73_vm13, %v195_v55, %v171_v35 }
  0xc2   :  { %v198_v63 = vsel %vm72_vm14, 0, %v196_v60 }
  0xc3   :  { %vm174_vm11 = vcmp.lt.s32.totalorder %v173_v34, 0  ;;  %v175_v37 = vsub.s32 0, %v173_v34  ;;  %v215_v4 = vadd.s32 3, %v198_v63 }
  0xc5   :  { %v176_v39 = vsel %vm174_vm11, %v175_v37, %v173_v34  ;;  %v216_v10 = vand.u32 3, %v215_v4 }
  0xc6   :  { %v177_v40 = vclz %v176_v39 }
  0xc7   :  { %vm218_vm15 = vcmp.eq.s32.totalorder %v216_v10, 0  ;;  %vm221_vm0 = vcmp.eq.s32.totalorder %v216_v10, 2  ;;  %vm217_vm1 = vcmp.lt.s32.totalorder %v216_v10, 2 }
  0xc8   :  { %v248_v41 = vadd.s32 4294967294, %v177_v40 }
  0xca   :  { %vm249_vm12 = vcmp.lt.s32.totalorder %v248_v41, 0 }
  0xcb   :  { %v180_v42 = vsel %vm249_vm12, 0, %v248_v41 }
  0xcc   :  { %v181_v43 = vsub.s32 32, %v180_v42  ;;  %v185_v44 = vsub.s32 4294967266, %v180_v42  ;;  %v182_v45 = vshll.u32 %v173_v34, %v180_v42 }
  0xce   :  { %v183_v46 = vshrl.u32 %v165_v16, %v181_v43  ;;  %v186_v47 = vadd.s32 127, %v185_v44 }
  0xd0   :  { %v184_v38 = vor.u32 %v183_v46, %v182_v45  ;;  %v187_v48 = vshll.u32 %v186_v47, 23 }
  0xd2   :  { %v188_v49 = vor.u32 4788187, %v187_v48  ;;  %v191_v51 = vcvt.s32.f32 %v184_v38 }
  0xd4   :  { %v189_v50 = vand.u32 2147483647, %v188_v49 }
  0xd6   :  { %v192_v52 = vmul.f32 %v191_v51, %v189_v50 }
  0xd8   :  { %v193_v53 = vxor.u32 2147483648, %v192_v52 }
  0xda   :  { %v194_v54 = vsel %vm73_vm13, %v193_v53, %v192_v52 }
  0xdb   :  { %v197_v56 = vsel %vm72_vm14, %v373_v5, %v194_v54 }
  0xdc   :  { %v199_v57 = vmul.f32 %v197_v56, %v197_v56 }
  0xde   :  { %v207_v58 = vmul.f32 -0.00019511016, %v199_v57  ;;  %v200_v59 = vmul.f32 -0.001358992, %v199_v57 }
  0xe0   :  { %v208_v61 = vadd.f32 0.008332121, %v207_v58  ;;  %v201_v62 = vadd.f32 0.041655596, %v200_v59 }
  0xe2   :  { %v209_v0 = vmul.f32 %v208_v61, %v199_v57  ;;  %v202_v1 = vmul.f32 %v201_v62, %v199_v57 }
  0xe4   :  { %v210_v2 = vadd.f32 -0.16666654, %v209_v0  ;;  %v203_v3 = vadd.f32 -0.4999988, %v202_v1 }
  0xe6   :  { %v211_v6 = vmul.f32 %v210_v2, %v199_v57  ;;  %v204_v7 = vmul.f32 %v203_v3, %v199_v57 }
  0xe8   :  { %v212_v8 = vadd.f32 1.0, %v211_v6  ;;  %v205_v9 = vadd.f32 1.0, %v204_v7 }
  0xea   :  { %v213_v11 = vmul.f32 %v212_v8, %v197_v56  ;;  %v222_v12 = vxor.u32 2147483648, %v205_v9 }
  0xec   :  { %v219_v13 = vxor.u32 2147483648, %v213_v11  ;;  %v223_v18 = vsel %vm221_vm0, %v222_v12, %v213_v11 }
  0xee   :  { %v220_v15 = vsel %vm218_vm15, %v205_v9, %v219_v13 }
  0xef   :  { %v224_v19 = vsel %vm217_vm1, %v220_v15, %v223_v18 }
  0xf0   :  { %v225_v20 = vsel %vm214_vm3, nan, %v224_v19 }
  0xf1   :  { %227 = vst.msk [vmem:[#allocation7] sm:$0xff] %vm226_vm2, %v225_v20 }
  0xf2   :  { %238 = dma.vmem_to_hbm [thread:$0]  %s234_s1, 128, %s236_s23, [#allocation4]  }
  0xf3   :  { %338 = dma.done.wait [#allocation4], 128  }
  0xf4   :  { %339 = vsyncadd [#allocation4], 4294967168 }
  0xf5   :  { %243 = vsyncpa [#allocation3], 1 }
  0xf6   :  { %244 = vsyncpa [#allocation6], 1 }
  0xf7   :  { %245 = vsyncpa [#allocation4], 1 }

</bundles_post_ra>
